<compile_context>
chip_gen: v7x
topology: tpu7x:2x2x1
jax: 0.10.0
libtpu: 0.0.40
codegen_flags: <defaults>
</compile_context>

<pallas_src>
import functools

import jax
import jax.numpy as jnp
from jax.experimental import pallas as pl
from jax.experimental.pallas import tpu as pltpu


def _round_up(x, m):
    return ((x + m - 1) // m) * m


def _linear_kernel_multi_k(x_ref, w_ref, b_ref, o_ref, acc_ref):
    """One (tm, tn) output tile; K (dim_in) is reduced over grid axis 2."""
    k = pl.program_id(2)

    @pl.when(k == 0)
    def _():
        acc_ref[...] = jnp.zeros_like(acc_ref)

    # MXU matmul (bf16 inputs, f32 accumulate).
    acc_ref[...] += jnp.dot(
        x_ref[...], w_ref[...], preferred_element_type=jnp.float32
    )

    @pl.when(k == pl.num_programs(2) - 1)
    def _():
        # Bias broadcast-add on the VPU in f32, cast only at the final store.
        o_ref[...] = (acc_ref[...] + b_ref[...].astype(jnp.float32)).astype(
            o_ref.dtype
        )


def _linear_kernel_single_k(x_ref, w_ref, b_ref, o_ref):
    """One (tm, tn) output tile; K fits in one tile -> no accumulator scratch."""
    acc = jnp.dot(x_ref[...], w_ref[...], preferred_element_type=jnp.float32)
    o_ref[...] = (acc + b_ref[...].astype(jnp.float32)).astype(o_ref.dtype)


@functools.partial(jax.jit, static_argnames=("tm", "tn", "tk"))
def mlp_forward(x, w_t, b, *, tm=256, tn=512, tk=512):
    """x: (B, dim_in), w_t: (dim_in, dim_out), b: (1, dim_out) -> (B, dim_out).

    Computes x @ w_t + b (i.e. PyTorch's x @ W^T + b with w_t = W^T).
    """
    B, dim_in = x.shape
    dim_out = w_t.shape[1]
    out_dtype = jnp.float32

    # MXU-friendly compute dtype: weights carry the dtype (bf16 by default);
    # activations are cast to match so the MXU sees a homogeneous bf16 matmul.
    compute_dtype = w_t.dtype
    x_c = x.astype(compute_dtype)

    # ---- tile sizes, clamped to (padded) problem size -----------------------
    m_align = _round_up(B, 8)
    k_align = _round_up(dim_in, 128)
    n_align = _round_up(dim_out, 128)
    tm = min(tm, m_align)
    tk = min(tk, k_align)
    tn = min(tn, n_align)

    # ---- pad operands once to tile multiples (lane/sublane dense) -----------
    Mp = _round_up(m_align, tm)
    Kp = _round_up(k_align, tk)
    Np = _round_up(n_align, tn)
    x_p = jnp.pad(x_c, ((0, Mp - B), (0, Kp - dim_in)))
    w_p = jnp.pad(w_t, ((0, Kp - dim_in), (0, Np - dim_out)))
    b_p = jnp.pad(b.astype(jnp.float32), ((0, 0), (0, Np - dim_out)))

    k_steps = Kp // tk
    itemsize_in = jnp.dtype(compute_dtype).itemsize
    cost = pl.CostEstimate(
        flops=2 * Mp * Kp * Np,
        transcendentals=0,
        bytes_accessed=(
            Mp * Kp * itemsize_in                       # x
            + Kp * Np * itemsize_in                     # w
            + Np * 4                                    # bias
            + Mp * Np * jnp.dtype(out_dtype).itemsize   # out
        ),
    )

    if k_steps == 1:
        # Single K tile: skip the accumulator scratch entirely.
        grid_spec = pltpu.PrefetchScalarGridSpec(
            num_scalar_prefetch=0,
            grid=(Mp // tm, Np // tn),
            in_specs=[
                pl.BlockSpec((tm, Kp), lambda i, j: (i, 0)),   # x tile
                pl.BlockSpec((Kp, tn), lambda i, j: (0, j)),   # w tile
                pl.BlockSpec((1, tn), lambda i, j: (0, j)),    # bias tile
            ],
            out_specs=pl.BlockSpec((tm, tn), lambda i, j: (i, j)),
        )
        kernel = _linear_kernel_single_k
        dim_sem = ("parallel", "parallel")
    else:
        grid_spec = pltpu.PrefetchScalarGridSpec(
            num_scalar_prefetch=0,
            grid=(Mp // tm, Np // tn, k_steps),
            in_specs=[
                pl.BlockSpec((tm, tk), lambda i, j, k: (i, k)),   # x tile
                pl.BlockSpec((tk, tn), lambda i, j, k: (k, j)),   # w tile
                pl.BlockSpec((1, tn), lambda i, j, k: (0, j)),    # bias tile
            ],
            out_specs=pl.BlockSpec((tm, tn), lambda i, j, k: (i, j)),
            scratch_shapes=[pltpu.VMEM((tm, tn), jnp.float32)],
        )
        kernel = _linear_kernel_multi_k
        dim_sem = ("parallel", "parallel", "arbitrary")

    out_p = pl.pallas_call(
        kernel,
        out_shape=jax.ShapeDtypeStruct((Mp, Np), out_dtype),
        grid_spec=grid_spec,
        compiler_params=pltpu.CompilerParams(dimension_semantics=dim_sem),
        cost_estimate=cost,
    )(x_p, w_p, b_p)

    # Slice the padding back off.
    return out_p[:B, :dim_out]


def init_mlp_params(key, dim_in, dim_out, param_dtype=jnp.bfloat16):
    """Deterministic init matching nn.Linear's default (uniform +-1/sqrt(dim_in)).

    Weight is returned pre-transposed as (dim_in, dim_out) in bf16 (MXU-native);
    bias stays f32 so the accumulate + bias path keeps full precision.
    """
    k_w, k_b = jax.random.split(key)
    bound = 1.0 / (dim_in ** 0.5)
    # PyTorch stores W as (dim_out, dim_in); we keep the transpose for the kernel.
    w = jax.random.uniform(
        k_w, (dim_out, dim_in), jnp.float32, minval=-bound, maxval=bound
    )
    b = jax.random.uniform(
        k_b, (dim_out,), jnp.float32, minval=-bound, maxval=bound
    )
    return w.T.astype(param_dtype), b.reshape(1, dim_out)


if __name__ == "__main__":
    key = jax.random.PRNGKey(0)
    k_x, k_p = jax.random.split(key)

    batch, dim_in, dim_out = 8, 32, 16
    x = jax.random.normal(k_x, (batch, dim_in), dtype=jnp.float32)
    w_t, b = init_mlp_params(k_p, dim_in, dim_out)

    out = mlp_forward(x, w_t, b)
    out = jax.block_until_ready(out)

    # Sanity check against the pure-JAX reference of nn.Linear, evaluated with
    # the same bf16-rounded operands the kernel consumes (f32 accumulate).
    x_r = x.astype(jnp.bfloat16).astype(jnp.float32)
    w_r = w_t.astype(jnp.float32)
    ref = x_r @ w_r + b
    assert out.shape == (batch, dim_out)
    assert jnp.allclose(out, ref, atol=1e-4, rtol=1e-4)

    # Also exercise the multi-K-tile path at a larger (still small) shape to
    # make sure the accumulator kernel compiles and matches the reference.
    batch2, dim_in2, dim_out2 = 64, 512, 256
    x2 = jax.random.normal(k_x, (batch2, dim_in2), dtype=jnp.float32)
    w_t2, b2 = init_mlp_params(k_p, dim_in2, dim_out2)
    out2 = jax.block_until_ready(mlp_forward(x2, w_t2, b2, tk=128))
    ref2 = x2.astype(jnp.bfloat16).astype(jnp.float32) @ w_t2.astype(jnp.float32) + b2
    assert out2.shape == (batch2, dim_out2)
    assert jnp.allclose(out2, ref2, atol=1e-2, rtol=1e-2)

    print("KERNEL_OK")
</pallas_src>

<mosaic_0001>
module attributes {stable_mosaic.version = 11 : i64} {
  func.func @_linear_kernel_single_k(%arg0: i32, %arg1: i32, %arg2: memref<8x128xbf16, #tpu.memory_space<vmem>>, %arg3: memref<128x128xbf16, #tpu.memory_space<vmem>>, %arg4: memref<1x128xf32, #tpu.memory_space<vmem>>, %arg5: memref<8x128xf32, #tpu.memory_space<vmem>>) attributes {dimension_semantics = [#tpu.dimension_semantics<parallel>, #tpu.dimension_semantics<parallel>], iteration_bounds = array<i64: 1, 1>, scalar_prefetch = 0 : i64, scratch_operands = 0 : i64, tpu.core_type = #tpu.core_type<tc>, window_params = [{transform_indices = @transform_0, window_bounds = array<i64: 8, 128>}, {transform_indices = @transform_1, window_bounds = array<i64: 128, 128>}, {transform_indices = @transform_2, window_bounds = array<i64: 1, 128>}, {transform_indices = @transform_3, window_bounds = array<i64: 8, 128>}]} {
    %c0 = arith.constant 0 : index
    %c0_0 = arith.constant 0 : index
    %0 = vector.load %arg2[%c0, %c0_0] : memref<8x128xbf16, #tpu.memory_space<vmem>>, vector<8x128xbf16>
    %c0_1 = arith.constant 0 : index
    %c0_2 = arith.constant 0 : index
    %1 = vector.load %arg3[%c0_1, %c0_2] : memref<128x128xbf16, #tpu.memory_space<vmem>>, vector<128x128xbf16>
    %cst = arith.constant dense<0.000000e+00> : vector<8x128xf32>
    %2 = tpu.matmul %0, %1, %cst {dimension_numbers = #tpu.dot_dimension_numbers<[1], [0], [0], [1], [0, 0, 1, 1], [], []>} : vector<8x128xbf16>, vector<128x128xbf16>, vector<8x128xf32> -> vector<8x128xf32>
    %c0_3 = arith.constant 0 : index
    %c0_4 = arith.constant 0 : index
    %3 = vector.load %arg4[%c0_3, %c0_4] : memref<1x128xf32, #tpu.memory_space<vmem>>, vector<1x128xf32>
    %4 = vector.broadcast %3 : vector<1x128xf32> to vector<8x128xf32>
    %5 = arith.addf %2, %4 : vector<8x128xf32>
    %c0_5 = arith.constant 0 : index
    %c0_6 = arith.constant 0 : index
    %6 = vector.load %arg5[%c0_5, %c0_6] : memref<8x128xf32, #tpu.memory_space<vmem>>, vector<8x128xf32>
    tpu.vector_store %arg5[%c0_5, %c0_6], %5 {strides = array<i32>} : memref<8x128xf32, #tpu.memory_space<vmem>>, vector<8x128xf32>,
    return
  }
  func.func @transform_0(%arg0: i32, %arg1: i32) -> (i32, i32) {
    %c0_i32 = arith.constant 0 : i32
    %c0_i32_0 = arith.constant 0 : i32
    return %arg0, %c0_i32 : i32, i32
  }
  func.func @transform_1(%arg0: i32, %arg1: i32) -> (i32, i32) {
    %c0_i32 = arith.constant 0 : i32
    %c0_i32_0 = arith.constant 0 : i32
    return %c0_i32, %arg1 : i32, i32
  }
  func.func @transform_2(%arg0: i32, %arg1: i32) -> (i32, i32) {
    %c0_i32 = arith.constant 0 : i32
    %c0_i32_0 = arith.constant 0 : i32
    return %c0_i32, %arg1 : i32, i32
  }
  func.func @transform_3(%arg0: i32, %arg1: i32) -> (i32, i32) {
    %c0_i32 = arith.constant 0 : i32
    return %arg0, %arg1 : i32, i32
  }
}

</mosaic_0001>

<bundles_post_ra>
// kernel: mlp_forward.1
= control target key start
LH: loop header
LB: loop body
LE: loop exit
PB: predicated region body
PF: predicated region fallthrough
CT: control target
= control target key end

     0   :  { %v216_v1 = vmov 0.0   ;;  %vm217_vm0 = vmmov 0   ;;  %s281_s0 = inlined_call_operand.vmem [shape: bf16[8,128], index: 0, kind: input, shape index: {}]   ;;  %s282_s1 = inlined_call_operand.vmem [shape: bf16[128,128], index: 1, kind: input, shape index: {}]   ;;  %s283_s2 = inlined_call_operand.vmem [shape: f32[1,128], index: 2, kind: input, shape index: {}]   ;;  %s284_s3 = inlined_call_operand.hbm [shape: f32[8,128], index: 3, kind: output, shape index: {}]  }
   0x1   :  { %v184_v0 = vld [vmem:[%s282_s1] sm:$0xff]   ;;  %161 = vmatprep.subr.bf16.mxu0 %v216_v1  ;;  %v185_v2 = vld [vmem:[%s282_s1 + $0x8] sm:$0xff]   ;;  %177 = vmatprep.mubr.msk.bf16.mxu0 %vm217_vm0, %v216_v1  ;;  %v186_v3 = vld [vmem:[%s282_s1 + $0x10] sm:$0xff]  }
   0x2   :  { %162 = vmatpush3.bf16.msra.mxu0 %v184_v0 }
   0x3   :  { %163 = vmatprep.subr.bf16.mxu0 %v216_v1 }
   0x6   :  { %164 = vmatpush3.bf16.msra.mxu0 %v185_v2 }
   0x7   :  { %165 = vmatprep.subr.bf16.mxu0 %v216_v1 }
   0x8   :  { %8 = vsyncpa [#allocation3], 0  ;;  %v187_v4 = vld [vmem:[%s282_s1 + $0x18] sm:$0xff]   ;;  %v188_v5 = vld [vmem:[%s282_s1 + $0x20] sm:$0xff]   ;;  %s218_s5 = smov [#allocation2]  }
   0x9   :  { %v189_v6 = vld [vmem:[%s282_s1 + $0x28] sm:$0xff]   ;;  %v190_v7 = vld [vmem:[%s282_s1 + $0x30] sm:$0xff]   ;;  %v191_v8 = vld [vmem:[%s282_s1 + $0x38] sm:$0xff]   ;;  %s135_s6 = sshll.u32 %s218_s5, 4  ;;  %s136_s6 = int_to_ptr.vmem [resolvable:$true] %s135_s6 }
   0xa   :  { %166 = vmatpush3.bf16.msra.mxu0 %v186_v3  ;;  %v16_v9 = vld [vmem:[%s281_s0] sm:$0xf]  ;;  %s192_s1 = scalar_lea.vmem %s136_s6, 128  ;;  %p197_p1 = scmp.lt.s32.totalorder %s136_s6, %s136_s6 }
   0xb   :  { %167 = vmatprep.subr.bf16.mxu0 %v216_v1  ;;  %v143_v10 = vld [vmem:[%s283_s2] ss:$0 sm:$0xff]  ;;  %p193_p0 = scmp.ne.s32.totalorder %s136_s6, %s192_s1  ;;  %p198_p2 = scmp.lt.s32.totalorder %s192_s1, %s192_s1 }
   0xd   :  { %p199_p3 = por %p198_p2, %p197_p1 }
   0xe   :  { %168 = vmatpush3.bf16.msra.mxu0 %v187_v4 }
   0xf   :  { %169 = vmatprep.subr.bf16.mxu0 %v216_v1  ;;  %p200_p4 = pnand %p199_p3, %p193_p0 }
  0x12   :  { %170 = vmatpush3.bf16.msra.mxu0 %v188_v5 }
  0x13   :  { %171 = vmatprep.subr.bf16.mxu0 %v216_v1 }
  0x16   :  { %172 = vmatpush3.bf16.msra.mxu0 %v189_v6 }
  0x17   :  { %173 = vmatprep.subr.bf16.mxu0 %v216_v1 }
  0x1a   :  { %174 = vmatpush3.bf16.msra.mxu0 %v190_v7 }
  0x1b   :  { %175 = vmatprep.subr.bf16.mxu0 %v216_v1 }
  0x1e   :  { %176 = vmatpush3.bf16.msra.mxu0 %v191_v8 }
  0x21   :  { %178 = vmatmul.mubr.bf16.vlgmr.msra.gmra.mrb[0].mxu0 %v16_v9 }
  0xf4   :  { %v122_v11 = vpop.f32.mrb[0].mxu0 }
  0xf5   :  { %v123_v12 = vadd.f32 %v143_v10, %v122_v11  ;;  %v179_v13 = vpop.f32.mrb[1].mxu0 }
  0xf6   :  { %v125_v14 = vpop.f32.mrb[2].mxu0 }
  0xf7   :  { %128 = vst [vmem:[#allocation2] sm:$0xff] %v123_v12  ;;  %v180_v15 = vpop.f32.mrb[3].mxu0 }
  0xf8   :  { %203 = shalt.err (!%p200_p4)
}
  0xf9   :  { %s204_s2 = scalar_lea.hbm %s284_s3, 128 }
  0xfa   :  { %p205_p5 = scmp.ne.s32.totalorder %s284_s3, %s204_s2  ;;  %p208_p6 = scmp.lt.u32.totalorder %s204_s2, %s284_s3 }
  0xfc   :  { %p210_p7 = pnand %p208_p6, %p205_p5 }
  0xfe   :  { %213 = shalt.err (!%p210_p7)
}
  0xff   :  { %138 = dma.vmem_to_hbm [thread:$0]  %s136_s6, 128, %s284_s3, [#allocation3]  }
 0x100   :  { %214 = dma.done.wait [#allocation3], 128  }
 0x101   :  { %215 = vsyncadd [#allocation3], 4294967168 }
 0x102   :  { %142 = vsyncpa [#allocation3], 1 }

</bundles_post_ra>
